<compile_context>
chip_gen: v7x
topology: tpu7x:2x2x1
jax: 0.10.0
libtpu: 0.0.40
codegen_flags: <defaults>
</compile_context>

<pallas_src>
import math

import jax
import jax.numpy as jnp
from jax.experimental import pallas as pl
from jax.experimental.pallas import tpu as pltpu


def _round_up(x, m):
    return (x + m - 1) // m * m


def siren_kernel(x_ref, w_ref, b_ref, o_ref):
    # x_ref: (tn, in_f) input dtype; w_ref: (in_f, t_out) bf16 (or f32);
    # b_ref: (1, t_out) f32.  omega_0 already folded into w_ref / b_ref.
    z = jnp.dot(x_ref[...].astype(w_ref.dtype), w_ref[...],
                preferred_element_type=jnp.float32)
    # Bias add and sin argument kept in f32 (phase-sensitive).
    o_ref[...] = jnp.sin(z + b_ref[...]).astype(o_ref.dtype)


def siren_forward(x, w_scaled_t, b_scaled, *, tile_n=1024, tile_out=None,
                  mxu_bf16=True, out_dtype=None):
    """SIREN layer forward: sin(x @ w_scaled_t + b_scaled).

    x:           (N, in_f)      f32 (or bf16)
    w_scaled_t:  (in_f, out_f)  f32, pre-transposed, pre-multiplied by omega_0
    b_scaled:    (out_f,)       f32, pre-multiplied by omega_0
    """
    N, in_f = x.shape
    in_f_w, out_f = w_scaled_t.shape
    assert in_f == in_f_w, (in_f, in_f_w)
    out_dtype = x.dtype if out_dtype is None else jnp.dtype(out_dtype)

    # Output column layout: keep out_f as-is when it is already lane-aligned or
    # small (< 128, single masked block); pad W/b (tiny) only otherwise.
    if out_f % 128 == 0 or out_f < 128:
        out_p = out_f
    else:
        out_p = _round_up(out_f, 128)

    w_dtype = jnp.bfloat16 if mxu_bf16 else w_scaled_t.dtype
    wp = w_scaled_t.astype(w_dtype)
    bp = b_scaled.astype(jnp.float32).reshape(1, out_f)
    if out_p != out_f:
        wp = jnp.pad(wp, ((0, 0), (0, out_p - out_f)))
        bp = jnp.pad(bp, ((0, 0), (0, out_p - out_f)))

    # Row tile: whole batch if it fits in one tile (full-dim block is always
    # legal), else a multiple-of-8 tile with a masked partial last tile.
    if N <= tile_n:
        tn = N
    else:
        tn = max(8, (tile_n // 8) * 8)

    # out_f tile: full width by default, tileable (multiples of 128) only when
    # out_p is lane-aligned.
    if out_p % 128 == 0 and tile_out is not None:
        t_out = min(out_p, max(128, (tile_out // 128) * 128))
    else:
        t_out = out_p

    # Generation-aware VMEM budget (48 MiB-ish on v7x, ~96 MiB on 128 MiB parts).
    try:
        vmem_cap = int(pltpu.get_tpu_info().vmem_capacity_bytes)
    except Exception:
        vmem_cap = 64 * 1024 * 1024  # conservative (v7x per-core)
    budget = min(vmem_cap * 3 // 4, 100 * 1024 * 1024)

    x_b = x.dtype.itemsize
    w_b = jnp.dtype(w_dtype).itemsize
    o_b = jnp.dtype(out_dtype).itemsize

    def _footprint(tn_, to_):
        # Double-buffered streamed x / out tiles + (conservatively 2x) W / b.
        return (2 * tn_ * in_f * x_b + 2 * tn_ * to_ * o_b
                + 2 * in_f * to_ * w_b + 2 * to_ * 4)

    # Shrink the out_f tile first (keeps x traffic minimal), then the row tile.
    while out_p % 128 == 0 and t_out > 128 and _footprint(tn, t_out) > budget:
        t_out = max(128, ((t_out // 2 + 127) // 128) * 128)
    while tn > 512 and _footprint(tn, t_out) > budget:
        tn = max(512, (tn // 2 // 8) * 8)

    need = _footprint(tn, t_out)
    vmem_limit = int(min(budget, max(need * 5 // 4, 32 * 1024 * 1024)))

    grid = (pl.cdiv(out_p, t_out), pl.cdiv(N, tn))  # j (out tiles) slower, i faster

    cost = pl.CostEstimate(
        flops=2 * N * in_f * out_p,
        transcendentals=N * out_p,
        bytes_accessed=(N * in_f * x_b + in_f * out_p * w_b
                        + out_p * 4 + N * out_p * o_b),
    )

    out = pl.pallas_call(
        siren_kernel,
        out_shape=jax.ShapeDtypeStruct((N, out_p), out_dtype),
        grid_spec=pltpu.PrefetchScalarGridSpec(
            num_scalar_prefetch=0,
            grid=grid,
            in_specs=[
                pl.BlockSpec((tn, in_f), lambda j, i: (i, 0)),     # streamed x
                pl.BlockSpec((in_f, t_out), lambda j, i: (0, j)),  # resident W (per j)
                pl.BlockSpec((1, t_out), lambda j, i: (0, j)),     # resident b (per j)
            ],
            out_specs=pl.BlockSpec((tn, t_out), lambda j, i: (i, j)),
        ),
        compiler_params=pltpu.CompilerParams(
            dimension_semantics=("parallel", "parallel"),
            vmem_limit_bytes=vmem_limit,
        ),
        cost_estimate=cost,
    )(x, wp, bp)

    if out_p != out_f:
        out = out[:, :out_f]
    return out


def init_siren_params(key, in_features, out_features, is_first, omega_0):
    """Deterministic init mirroring SIREN.init_weights + nn.Linear bias init.

    Returns (w_t, b) with w_t = W^T of shape (in_f, out_f), UNscaled.
    Fold omega_0 in once afterwards (w_t * omega_0, b * omega_0) for the kernel.
    """
    kw, kb = jax.random.split(key)
    if is_first:
        bound_w = 1.0 / in_features
    else:
        bound_w = math.sqrt(6.0 / in_features) / omega_0
    w = jax.random.uniform(kw, (out_features, in_features), jnp.float32,
                           minval=-bound_w, maxval=bound_w)
    bound_b = 1.0 / math.sqrt(in_features)
    b = jax.random.uniform(kb, (out_features,), jnp.float32,
                           minval=-bound_b, maxval=bound_b)
    return w.T, b


if __name__ == "__main__":
    def run_case(case_key, N, in_f, out_f, is_first, omega_0, **kw):
        k_x, k_p = jax.random.split(case_key)
        x = jax.random.normal(k_x, (N, in_f), dtype=jnp.float32)
        w_t, b = init_siren_params(k_p, in_f, out_f, is_first, omega_0)

        # Fold omega_0 into the static parameters once (not per-forward).
        w_s = (w_t * omega_0).astype(jnp.float32)
        b_s = (b * omega_0).astype(jnp.float32)

        y = siren_forward(x, w_s, b_s, **kw)
        y = jax.block_until_ready(y)
        assert y.shape == (N, out_f), y.shape

        # Tight check vs the same bf16-operand / f32-accum math the kernel does.
        z_ref = jnp.dot(x.astype(jnp.bfloat16), w_s.astype(jnp.bfloat16),
                        preferred_element_type=jnp.float32) + b_s[None, :]
        y_bf16_ref = jnp.sin(z_ref)
        assert jnp.allclose(y, y_bf16_ref, atol=1e-4, rtol=1e-4), float(
            jnp.max(jnp.abs(y - y_bf16_ref)))

        # Loose check vs the full-f32 module semantics (bf16 MXU operand noise).
        y_f32_ref = jnp.sin(omega_0 * (x @ w_t + b[None, :]))
        assert jnp.allclose(y, y_f32_ref, atol=5e-2, rtol=5e-2), float(
            jnp.max(jnp.abs(y - y_f32_ref)))

    key = jax.random.PRNGKey(0)
    k1, k2 = jax.random.split(key)

    # Tiny first layer: out_f < 128 -> single sub-lane-width block, no pad/slice.
    run_case(k1, N=8, in_f=32, out_f=32, is_first=True, omega_0=30.0)

    # Hidden layer: partial last row tile (200 % 64 != 0) + 2 out_f tiles.
    run_case(k2, N=200, in_f=32, out_f=256, is_first=False, omega_0=30.0,
             tile_n=64, tile_out=128)

    print("KERNEL_OK")
</pallas_src>

<mosaic_0001>
module attributes {stable_mosaic.version = 11 : i64} {
  func.func @siren_kernel(%arg0: i32, %arg1: i32, %arg2: memref<8x32xf32, #tpu.memory_space<vmem>>, %arg3: memref<32x32xbf16, #tpu.memory_space<vmem>>, %arg4: memref<1x32xf32, #tpu.memory_space<vmem>>, %arg5: memref<8x32xf32, #tpu.memory_space<vmem>>) attributes {dimension_semantics = [#tpu.dimension_semantics<parallel>, #tpu.dimension_semantics<parallel>], iteration_bounds = array<i64: 1, 1>, scalar_prefetch = 0 : i64, scratch_operands = 0 : i64, tpu.core_type = #tpu.core_type<tc>, window_params = [{transform_indices = @transform_0, window_bounds = array<i64: 8, 32>}, {transform_indices = @transform_1, window_bounds = array<i64: 32, 32>}, {transform_indices = @transform_2, window_bounds = array<i64: 1, 32>}, {transform_indices = @transform_3, window_bounds = array<i64: 8, 32>}]} {
    %c0 = arith.constant 0 : index
    %c0_0 = arith.constant 0 : index
    %0 = vector.load %arg2[%c0, %c0_0] : memref<8x32xf32, #tpu.memory_space<vmem>>, vector<8x32xf32>
    %1 = arith.truncf %0 : vector<8x32xf32> to vector<8x32xbf16>
    %c0_1 = arith.constant 0 : index
    %c0_2 = arith.constant 0 : index
    %2 = vector.load %arg3[%c0_1, %c0_2] : memref<32x32xbf16, #tpu.memory_space<vmem>>, vector<32x32xbf16>
    %cst = arith.constant dense<0.000000e+00> : vector<8x32xf32>
    %3 = tpu.matmul %1, %2, %cst {dimension_numbers = #tpu.dot_dimension_numbers<[1], [0], [0], [1], [0, 0, 1, 1], [], []>} : vector<8x32xbf16>, vector<32x32xbf16>, vector<8x32xf32> -> vector<8x32xf32>
    %c0_3 = arith.constant 0 : index
    %c0_4 = arith.constant 0 : index
    %4 = vector.load %arg4[%c0_3, %c0_4] : memref<1x32xf32, #tpu.memory_space<vmem>>, vector<1x32xf32>
    %5 = vector.broadcast %4 : vector<1x32xf32> to vector<8x32xf32>
    %6 = arith.addf %3, %5 : vector<8x32xf32>
    %7 = math.sin %6 : vector<8x32xf32>
    %c0_5 = arith.constant 0 : index
    %c0_6 = arith.constant 0 : index
    %8 = vector.load %arg5[%c0_5, %c0_6] : memref<8x32xf32, #tpu.memory_space<vmem>>, vector<8x32xf32>
    tpu.vector_store %arg5[%c0_5, %c0_6], %7 {strides = array<i32>} : memref<8x32xf32, #tpu.memory_space<vmem>>, vector<8x32xf32>,
    return
  }
  func.func @transform_0(%arg0: i32, %arg1: i32) -> (i32, i32) {
    %c0_i32 = arith.constant 0 : i32
    %c0_i32_0 = arith.constant 0 : i32
    return %arg1, %c0_i32 : i32, i32
  }
  func.func @transform_1(%arg0: i32, %arg1: i32) -> (i32, i32) {
    %c0_i32 = arith.constant 0 : i32
    %c0_i32_0 = arith.constant 0 : i32
    return %c0_i32, %arg0 : i32, i32
  }
  func.func @transform_2(%arg0: i32, %arg1: i32) -> (i32, i32) {
    %c0_i32 = arith.constant 0 : i32
    %c0_i32_0 = arith.constant 0 : i32
    return %c0_i32, %arg0 : i32, i32
  }
  func.func @transform_3(%arg0: i32, %arg1: i32) -> (i32, i32) {
    %c0_i32 = arith.constant 0 : i32
    return %arg1, %arg0 : i32, i32
  }
}

</mosaic_0001>

<bundles_post_ra>
// kernel: tpu_custom_call.1
= control target key start
LH: loop header
LB: loop body
LE: loop exit
PB: predicated region body
PF: predicated region fallthrough
CT: control target
= control target key end

     0   :  { %8 = vsyncpa [#allocation3], 0  ;;  %s448_s0 = inlined_call_operand.hbm [shape: f32[8,32], index: 0, kind: input, shape index: {}]   ;;  %s449_s1 = inlined_call_operand.hbm [shape: bf16[32,32], index: 1, kind: input, shape index: {}]   ;;  %s450_s2 = inlined_call_operand.vmem [shape: f32[1,32], index: 2, kind: input, shape index: {}]   ;;  %s451_s3 = inlined_call_operand.hbm [shape: f32[8,32], index: 3, kind: output, shape index: {}]  }
   0x1   :  { %9 = vsyncpa [#allocation6], 0 }
   0x2   :  { %10 = vsyncpa [#allocation4], 0  ;;  %s346_s12 = smov [#allocation2]   ;;  %s347_s14 = smov [#allocation5]  }
   0x3   :  { %s17_s13 = sshll.u32 %s346_s12, 4  ;;  %s26_s15 = sshll.u32 %s347_s14, 4  ;;  %s18_s13 = int_to_ptr.vmem [resolvable:$true] %s17_s13  ;;  %s379_s15 = int_to_ptr.vmem [resolvable:$true] %s26_s15 }
   0x4   :  { %s274_s18 = scalar_lea.hbm %s448_s0, 128 }
   0x5   :  { %p275_p0 = scmp.ne.s32.totalorder %s448_s0, %s274_s18  ;;  %p278_p1 = scmp.lt.u32.totalorder %s274_s18, %s448_s0 }
   0x7   :  { %p280_p2 = pnand %p278_p1, %p275_p0 }
   0x9   :  { %283 = shalt.err (!%p280_p2)
}
   0xa   :  { %s284_s23 = scalar_lea.vmem %s18_s13, 128  ;;  %p289_p4 = scmp.lt.s32.totalorder %s18_s13, %s18_s13 }
   0xb   :  { %p285_p3 = scmp.ne.s32.totalorder %s18_s13, %s284_s23  ;;  %p290_p5 = scmp.lt.s32.totalorder %s284_s23, %s284_s23 }
   0xd   :  { %p291_p6 = por %p290_p5, %p289_p4 }
   0xf   :  { %p292_p7 = pnand %p291_p6, %p285_p3 }
  0x11   :  { %295 = shalt.err (!%p292_p7)
}
  0x12   :  { %20 = dma.hbm_to_vmem [thread:$0]  %s448_s0, 128, %s18_s13, [#allocation3]  }
  0x13   :  { %s296_s28 = scalar_lea.hbm %s449_s1, 256 }
  0x14   :  { %p297_p8 = scmp.ne.s32.totalorder %s449_s1, %s296_s28  ;;  %p300_p9 = scmp.lt.u32.totalorder %s296_s28, %s449_s1 }
  0x16   :  { %p302_p10 = pnand %p300_p9, %p297_p8 }
  0x18   :  { %305 = shalt.err (!%p302_p10)
}
  0x19   :  { %s306_s6 = scalar_lea.vmem %s379_s15, 256  ;;  %p311_p12 = scmp.lt.s32.totalorder %s379_s15, %s379_s15 }
  0x1a   :  { %p307_p11 = scmp.ne.s32.totalorder %s379_s15, %s306_s6  ;;  %p312_p13 = scmp.lt.s32.totalorder %s306_s6, %s306_s6 }
  0x1c   :  { %p313_p0 = por %p312_p13, %p311_p12 }
  0x1e   :  { %p314_p1 = pnand %p313_p0, %p307_p11 }
  0x20   :  { %317 = shalt.err (!%p314_p1)
}
  0x21   :  { %s348_s0 = smov 64   ;;  %s349_s7 = smov 4  }
  0x22   :  { %32 = dma.hbm_to_vmem [thread:$0]  %s449_s1, 256, %s379_s15, [#allocation6], %s348_s0, %s348_s0, %s349_s7  }
  0x23   :  { %340 = dma.done.wait [#allocation3], 128  }
  0x24   :  { %341 = vsyncadd [#allocation3], 4294967168 }
  0x25   :  { %342 = dma.done.wait [#allocation6], 256  }
  0x26   :  { %343 = vsyncadd [#allocation6], 4294967040  ;;  %v350_v0 = vmov 0.0   ;;  %vm351_vm0 = vmmov 0   ;;  %v268_v1 = vld [vmem:[#allocation5] sm:$0xff]   ;;  %v269_v2 = vld [vmem:[#allocation5 + $0x8] sm:$0xff]  }
  0x27   :  { %243 = vmatprep.subr.bf16.mxu0 %v350_v0  ;;  %247 = vmatprep.mubr.msk.bf16.mxu0 %vm351_vm0, %v350_v0  ;;  %v42_v3 = vld [vmem:[#allocation2] sm:$0xff]  ;;  %vm67_vm1 = vcmask 261120   ;;  %v352_v21 = vmov 683565275   ;;  %v353_v23 = vmov 2475754826  }
  0x28   :  { %244 = vmatpush3.bf16.msra.mxu0 %v268_v1  ;;  %v43_v4 = vpack.c.bf16 %v42_v3, %v42_v3  ;;  %v232_v5 = vld [vmem:[%s450_s2] ss:$0 sm:$0xff]  ;;  %v354_v26 = vmov 2131351028   ;;  %v355_v29 = vmov 2102212464  }
  0x29   :  { %245 = vmatprep.subr.bf16.mxu0 %v350_v0  ;;  %v356_v32 = vmov 920167782   ;;  %v357_v35 = vmov 1326507024   ;;  %s358_s2 = smov [#allocation7]  }
  0x2a   :  { %s222_s11 = sshll.u32 %s358_s2, 4  ;;  %s223_s11 = int_to_ptr.vmem [resolvable:$true] %s222_s11 }
  0x2b   :  { %s318_s12 = scalar_lea.vmem %s223_s11, 128  ;;  %p323_p3 = scmp.lt.s32.totalorder %s223_s11, %s223_s11 }
  0x2c   :  { %246 = vmatpush3.bf16.msra.mxu0 %v269_v2  ;;  %p319_p2 = scmp.ne.s32.totalorder %s223_s11, %s318_s12  ;;  %p324_p4 = scmp.lt.s32.totalorder %s318_s12, %s318_s12 }
  0x2e   :  { %p325_p5 = por %p324_p4, %p323_p3 }
  0x2f   :  { %248 = vmatmul.mubr.msk.bf16.vlgmr.msra.gmra.mrb[0].mxu0 %vm67_vm1, %v43_v4 }
  0x30   :  { %p326_p6 = pnand %p325_p5, %p319_p2 }
 0x102   :  { %v105_v6 = vpop.f32.mrb[0].mxu0 }
 0x103   :  { %v414_v7 = vadd.f32 %v232_v5, %v105_v6  ;;  %v249_v8 = vpop.f32.mrb[1].mxu0 }
 0x104   :  { %v108_v9 = vpop.f32.mrb[2].mxu0 }
 0x105   :  { %v114_v10 = vand.u32 2139095040, %v414_v7  ;;  %v250_v11 = vpop.f32.mrb[3].mxu0  ;;  %v111_v15 = vand.u32 2147483647, %v414_v7  ;;  %vm113_vm9 = vcmp.lt.s32.totalorder %v414_v7, 0  ;;  %vm203_vm14 = vweird.f32 %v414_v7 }
 0x107   :  { %v115_v12 = vshrl.u32 %v114_v10, 23  ;;  %v118_v18 = vand.u32 8388607, %v111_v15  ;;  %vm112_vm10 = vcmp.le.f32.partialorder %v111_v15, 0.7853982 }
 0x109   :  { %v236_v13 = vadd.s32 4294967169, %v115_v12  ;;  %v119_v37 = vor.u32 8388608, %v118_v18 }
 0x10b   :  { %v121_v14 = vadd.s32 1, %v236_v13  ;;  %v159_v51 = vshll.u32 %v119_v37, 8 }
 0x10d   :  { %vm122_vm2 = vcmp.gt.s32.totalorder %v121_v14, 0 }
 0x10e   :  { %v123_v16 = vsel %vm122_vm2, %v121_v14, 0 }
 0x10f   :  { %v125_v17 = vand.u32 31, %v123_v16  ;;  %v124_v20 = vshrl.u32 %v123_v16, 5 }
 0x111   :  { %v126_v19 = vsub.s32 32, %v125_v17  ;;  %v128_v22 = vshll.u32 %v352_v21, %v125_v17  ;;  %v131_v24 = vshll.u32 %v353_v23, %v125_v17  ;;  %v134_v28 = vshll.u32 %v354_v26, %v125_v17 }
 0x112   :  { %v137_v31 = vshll.u32 %v355_v29, %v125_v17  ;;  %v140_v34 = vshll.u32 %v356_v32, %v125_v17  ;;  %vm143_vm3 = vcmp.lt.s32.totalorder %v124_v20, 1  ;;  %vm146_vm4 = vcmp.lt.s32.totalorder %v124_v20, 4 }
 0x113   :  { %v129_v25 = vshrl.u32 %v353_v23, %v126_v19  ;;  %v132_v27 = vshrl.u32 %v354_v26, %v126_v19  ;;  %v135_v30 = vshrl.u32 %v355_v29, %v126_v19  ;;  %v138_v33 = vshrl.u32 %v356_v32, %v126_v19 }
 0x114   :  { %v141_v36 = vshrl.u32 %v357_v35, %v126_v19  ;;  %v127_v46 = vshrl.u32 %v352_v21, %v126_v19  ;;  %vm145_vm5 = vcmp.lt.s32.totalorder %v124_v20, 3  ;;  %vm144_vm6 = vcmp.lt.s32.totalorder %v124_v20, 2 }
 0x115   :  { %v130_v38 = vor.u32 %v129_v25, %v128_v22  ;;  %v133_v39 = vor.u32 %v132_v27, %v131_v24  ;;  %v136_v40 = vor.u32 %v135_v30, %v134_v28  ;;  %v139_v41 = vor.u32 %v138_v33, %v137_v31 }
 0x116   :  { %v142_v42 = vor.u32 %v141_v36, %v140_v34 }
 0x117   :  { %v148_v43 = vsel %vm146_vm4, %v136_v40, 2102212464  ;;  %v151_v44 = vsel %vm143_vm3, %v130_v38, %v133_v39  ;;  %v155_v45 = vsel %vm143_vm3, %v133_v39, %v136_v40  ;;  %v152_v47 = vsel %vm146_vm4, %v139_v41, 920167782 }
 0x118   :  { %v156_v48 = vsel %vm146_vm4, %v142_v42, 1326507024  ;;  %v153_v49 = vsel %vm145_vm5, %v136_v40, %v152_v47  ;;  %v147_v52 = vsel %vm143_vm3, %v127_v46, %v130_v38  ;;  %v149_v53 = vsel %vm145_vm5, %v133_v39, %v148_v43 }
 0x119   :  { %v157_v50 = vsel %vm145_vm5, %v139_v41, %v156_v48  ;;  %v154_v54 = vsel %vm144_vm6, %v151_v44, %v153_v49  ;;  %v150_v60 = vsel %vm144_vm6, %v147_v52, %v149_v53 }
 0x11a   :  { %v158_v55 = vsel %vm144_vm6, %v155_v45, %v157_v50  ;;  %v423_v58 = vmul.u32.u64.low %v159_v51, %v154_v54  ;;  %v424_v59 = vmul.u32.u64.high %v159_v51, %v154_v54, %v423_v58  ;;  %v166_v62 = vmul.u32 %v159_v51, %v150_v60 }
 0x11b   :  { %v420_v56 = vmul.u32.u64.low %v159_v51, %v158_v55  ;;  %v421_v57 = vmul.u32.u64.high %v159_v51, %v158_v55, %v420_v56 }
 0x11c   :  { %v169_v61 = vadd.s32 1, %v424_v59 }
 0x11d   :  { %vm168_vm7 = vc.u32 %v421_v57, %v423_v58  ;;  %v167_v11 = vadd.s32 %v423_v58, %v421_v57 }
 0x11e   :  { %v170_v63 = vsel %vm168_vm7, %v169_v61, %v424_v59 }
 0x11f   :  { %v171_v0 = vadd.s32 %v170_v63, %v166_v62 }
 0x121   :  { %v172_v1 = vadd.s32 536870912, %v171_v0 }
 0x123   :  { %v173_v2 = vshrl.u32 %v172_v1, 30 }
 0x125   :  { %v174_v3 = vshll.u32 %v173_v2, 30  ;;  %v197_v24 = vsub.s32 4, %v173_v2 }
 0x127   :  { %v175_v4 = vsub.s32 %v171_v0, %v174_v3  ;;  %v198_v27 = vsel %vm113_vm9, %v197_v24, %v173_v2 }
 0x128   :  { %v200_v29 = vsel %vm112_vm10, 0, %v198_v27 }
 0x129   :  { %v177_v5 = vsub.s32 0, %v175_v4  ;;  %v204_v30 = vadd.s32 3, %v200_v29 }
 0x12b   :  { %v237_v6 = vmin.u32 %v177_v5, %v175_v4  ;;  %v205_v31 = vand.u32 3, %v204_v30 }
 0x12d   :  { %v179_v8 = vclz %v237_v6  ;;  %vm210_vm11 = vcmp.eq.s32.totalorder %v205_v31, 2  ;;  %vm207_vm12 = vcmp.eq.s32.totalorder %v205_v31, 0  ;;  %vm206_vm13 = vcmp.lt.s32.totalorder %v205_v31, 2 }
 0x12f   :  { %v238_v9 = vadd.s32 4294967294, %v179_v8 }
 0x131   :  { %vm239_vm8 = vcmp.lt.s32.totalorder %v238_v9, 0 }
 0x132   :  { %v182_v10 = vsel %vm239_vm8, 0, %v238_v9 }
 0x133   :  { %v183_v12 = vsub.s32 32, %v182_v10  ;;  %v187_v13 = vsub.s32 4294967266, %v182_v10  ;;  %v184_v14 = vshll.u32 %v175_v4, %v182_v10 }
 0x135   :  { %v185_v16 = vshrl.u32 %v167_v11, %v183_v12  ;;  %v188_v17 = vadd.s32 127, %v187_v13 }
 0x137   :  { %v186_v18 = vor.u32 %v185_v16, %v184_v14  ;;  %v189_v19 = vshll.u32 %v188_v17, 23 }
 0x139   :  { %v190_v20 = vor.u32 4788187, %v189_v19  ;;  %v193_v22 = vcvt.s32.f32 %v186_v18 }
 0x13b   :  { %v191_v21 = vand.u32 2147483647, %v190_v20 }
 0x13d   :  { %v194_v23 = vmul.f32 %v193_v22, %v191_v21 }
 0x13f   :  { %v195_v25 = vxor.u32 2147483648, %v194_v23 }
 0x141   :  { %v196_v26 = vsel %vm113_vm9, %v195_v25, %v194_v23 }
 0x142   :  { %v199_v28 = vsel %vm112_vm10, %v414_v7, %v196_v26 }
 0x143   :  { %270 = vcosq.f32 %v199_v28 }
 0x144   :  { %272 = vsinq.f32 %v199_v28 }
 0x14d   :  { %v271_v32 = vpop.eup %270 }
 0x14e   :  { %v273_v33 = vpop.eup %272  ;;  %v211_v34 = vxor.u32 2147483648, %v271_v32 }
 0x14f   :  { %v208_v35 = vxor.u32 2147483648, %v273_v33 }
 0x150   :  { %v212_v36 = vsel %vm210_vm11, %v211_v34, %v273_v33 }
 0x151   :  { %v209_v15 = vsel %vm207_vm12, %v271_v32, %v208_v35 }
 0x152   :  { %v213_v37 = vsel %vm206_vm13, %v209_v15, %v212_v36 }
 0x153   :  { %v214_v38 = vsel %vm203_vm14, nan, %v213_v37 }
 0x154   :  { %215 = vst.msk [vmem:[#allocation7] sm:$0xff] %vm67_vm1, %v214_v38 }
 0x155   :  { %329 = shalt.err (!%p326_p6)
}
 0x156   :  { %s330_s15 = scalar_lea.hbm %s451_s3, 128 }
 0x157   :  { %p331_p7 = scmp.ne.s32.totalorder %s451_s3, %s330_s15  ;;  %p334_p8 = scmp.lt.u32.totalorder %s330_s15, %s451_s3 }
 0x159   :  { %p336_p9 = pnand %p334_p8, %p331_p7 }
 0x15b   :  { %339 = shalt.err (!%p336_p9)
}
 0x15c   :  { %225 = dma.vmem_to_hbm [thread:$0]  %s223_s11, 128, %s451_s3, [#allocation4]  }
 0x15d   :  { %344 = dma.done.wait [#allocation4], 128  }
 0x15e   :  { %345 = vsyncadd [#allocation4], 4294967168 }
 0x15f   :  { %229 = vsyncpa [#allocation3], 1 }
 0x160   :  { %230 = vsyncpa [#allocation6], 1 }
 0x161   :  { %231 = vsyncpa [#allocation4], 1 }

</bundles_post_ra>
